<compile_context>
chip_gen: v5e
topology: v5e:2x2
jax: 0.10.0
libtpu: 0.0.40
codegen_flags: <defaults>
</compile_context>

<pallas_src>
import jax
import jax.numpy as jnp
import numpy as np
from jax.experimental import pallas as pl
from jax.experimental.pallas import tpu as pltpu

NUM_TARGETS = 4
NUM_QUARTILES = 3
EPS = 1e-6
LANES = 128                                     # padded output width (full lane dim)
HEADS_W = (5 + NUM_QUARTILES) * NUM_TARGETS     # 32: mu,sigma,ua,ub,alpha,quartiles


def _heads_kernel(x_ref, wfm_ref, bfm_ref, wx_ref, wf_ref, bh_ref, out_ref):
    T = NUM_TARGETS
    x = x_ref[...]                                          # (tb, F) bf16 (or f32)

    # fm head, padded to LANES output columns; only lanes [0, T) are real.
    h_fm = jnp.dot(x, wfm_ref[...], preferred_element_type=jnp.float32) + bfm_ref[...]
    fm_full = jax.nn.sigmoid(h_fm)                          # (tb, LANES) f32

    # Fused remaining heads; real outputs live in lanes [T, T + HEADS_W).
    z = (jnp.dot(x, wx_ref[...], preferred_element_type=jnp.float32)
         + jnp.dot(fm_full.astype(x.dtype), wf_ref[...],
                   preferred_element_type=jnp.float32)
         + bh_ref[...])                                     # (tb, LANES) f32

    lane = jax.lax.broadcasted_iota(jnp.int32, z.shape, 1)

    sig = jax.nn.sigmoid(z)
    sp = jnp.maximum(jax.nn.softplus(z), EPS)
    # sigma lanes [2T,3T) use softplus; everything else sigmoid.
    act = jnp.where((lane >= 2 * T) & (lane < 3 * T), sp, sig)
    # alpha clamp to [eps, 1-eps]  (lanes [5T, 6T)).
    act = jnp.where((lane >= 5 * T) & (lane < 6 * T),
                    jnp.clip(act, EPS, 1.0 - EPS), act)
    # uniform_b = max(uniform_b, uniform_a + eps): ua sits T lanes below ub,
    # so a lane roll by T aligns ua with the ub lanes (cheap XLU full-tile op).
    shifted = pltpu.roll(act, shift=T, axis=1)
    act = jnp.where((lane >= 4 * T) & (lane < 5 * T),
                    jnp.maximum(act, shifted + EPS), act)

    # Final slab: lanes [0,T) = fm, [T, T+H) = activated heads, rest = padding.
    out_ref[...] = jnp.where(lane < T, fm_full, act)


def _round_up(n, m):
    return (n + m - 1) // m * m


def _pad_params(params, in_features):
    """Zero-pad all head weights/biases to a 128-lane output width (f32)."""
    T, H, W = NUM_TARGETS, HEADS_W, LANES
    w_fm, b_fm, wx, wf, bh = params
    f32 = jnp.float32
    wfm_p = jnp.zeros((in_features, W), f32).at[:, :T].set(w_fm.astype(f32))
    bfm_p = jnp.zeros((1, W), f32).at[:, :T].set(b_fm.reshape(1, T).astype(f32))
    wx_p = jnp.zeros((in_features, W), f32).at[:, T:T + H].set(wx.astype(f32))
    wf_p = jnp.zeros((W, W), f32).at[:T, T:T + H].set(wf.astype(f32))
    bh_p = jnp.zeros((1, W), f32).at[:, T:T + H].set(bh.reshape(1, H).astype(f32))
    return wfm_p, bfm_p, wx_p, wf_p, bh_p


def mixture_model_heads(x, params, *, tb=512, use_bf16=True):
    """x: [B, in_features].  Returns (mu, sigma, fm, uniform_a, uniform_b, alpha, quartiles)."""
    B, F = x.shape
    T, Q, W = NUM_TARGETS, NUM_QUARTILES, LANES

    in_dtype = jnp.bfloat16 if use_bf16 else jnp.float32
    in_bytes = 2 if use_bf16 else 4

    # Batch tile: big enough to amortize per-step overhead (~0.35us/step) and
    # fill the MXU M dimension, but (a) keep >= 2 grid steps where possible so
    # v7x can shard the parallel axis across its two TCs, and (b) cap the
    # double-buffered x tile at ~8 MiB of VMEM (safe under v7x's 32 MiB scoped).
    tb = min(tb, max(8, _round_up(pl.cdiv(B, 2), 8)))
    tb_cap = max(8, ((8 << 20) // (2 * F * in_bytes)) // 8 * 8)
    tb = max(8, min(tb, tb_cap))

    Bp = _round_up(B, tb)
    xp = x.astype(in_dtype)
    if Bp != B:
        xp = jnp.pad(xp, ((0, Bp - B), (0, 0)))

    wfm_p, bfm_p, wx_p, wf_p, bh_p = _pad_params(params, F)
    wfm_p = wfm_p.astype(in_dtype)
    wx_p = wx_p.astype(in_dtype)
    wf_p = wf_p.astype(in_dtype)

    row = lambda i: (i, 0)   # tile over batch rows
    rep = lambda i: (0, 0)   # weights replicated per grid step

    flops = 2 * Bp * W * (2 * F + W)
    bytes_accessed = (Bp * F * in_bytes                  # x
                      + (2 * F * W + W * W) * in_bytes   # weights
                      + 2 * W * 4                        # biases
                      + Bp * W * 4)                      # output slab
    cost = pl.CostEstimate(flops=flops, transcendentals=3 * Bp * W,
                           bytes_accessed=bytes_accessed)

    slab = pl.pallas_call(
        _heads_kernel,
        out_shape=jax.ShapeDtypeStruct((Bp, W), jnp.float32),
        grid=(Bp // tb,),
        in_specs=[
            pl.BlockSpec((tb, F), row),
            pl.BlockSpec((F, W), rep),
            pl.BlockSpec((1, W), rep),
            pl.BlockSpec((F, W), rep),
            pl.BlockSpec((W, W), rep),
            pl.BlockSpec((1, W), rep),
        ],
        out_specs=pl.BlockSpec((tb, W), row),
        compiler_params=pltpu.CompilerParams(dimension_semantics=("parallel",)),
        cost_estimate=cost,
    )(xp, wfm_p, bfm_p, wx_p, wf_p, bh_p)

    slab = slab[:B]
    fm = slab[:, 0:T]
    mu = slab[:, T:2 * T]
    sigma = slab[:, 2 * T:3 * T]
    ua = slab[:, 3 * T:4 * T]
    ub = slab[:, 4 * T:5 * T]
    alpha = slab[:, 5 * T:6 * T]
    quart = slab[:, 6 * T:6 * T + Q * T]
    return (mu, sigma, fm, ua, ub, alpha, quart)


def init_params(key, in_features):
    """Deterministic synthetic params.  Weights stored as (in, out) for x @ W."""
    T, Q = NUM_TARGETS, NUM_QUARTILES
    H = (5 + Q) * T
    ks = jax.random.split(key, 4)

    def u(k, shape, fan_in):
        bound = 1.0 / np.sqrt(fan_in)
        return jax.random.uniform(k, shape, jnp.float32, -bound, bound)

    w_fm = u(ks[0], (in_features, T), in_features)
    b_fm = u(ks[1], (1, T), in_features)
    # Fused weight for (mu, sigma, uniform_a, uniform_b, alpha, quartiles),
    # acting on concat(x, fm); split into x-part and fm-part so the kernel
    # never materializes the concat.
    w_big = u(ks[2], (in_features + T, H), in_features + T)
    b_big = u(ks[3], (1, H), in_features + T)
    wx = w_big[:in_features, :]
    wf = w_big[in_features:, :]
    return (w_fm, b_fm, wx, wf, b_big)


def reference(x, params, *, matmul_dtype=jnp.float32):
    """Pure-JAX reference mirroring the PyTorch forward.

    matmul_dtype=jnp.bfloat16 mirrors the kernel's bf16 MXU inputs (f32 math)
    for a tight numerical comparison.
    """
    T = NUM_TARGETS
    w_fm, b_fm, wx, wf, bh = params
    c = lambda a: a.astype(matmul_dtype).astype(jnp.float32)
    xm = c(x)
    fm = jax.nn.sigmoid(xm @ c(w_fm) + b_fm)
    z = xm @ c(wx) + c(fm) @ c(wf) + bh
    mu = jax.nn.sigmoid(z[:, 0 * T:1 * T])
    sigma = jnp.maximum(jax.nn.softplus(z[:, 1 * T:2 * T]), EPS)
    ua = jax.nn.sigmoid(z[:, 2 * T:3 * T])
    ub = jax.nn.sigmoid(z[:, 3 * T:4 * T])
    alpha = jax.nn.sigmoid(z[:, 4 * T:5 * T])
    quart = jax.nn.sigmoid(z[:, 5 * T:])
    alpha = jnp.clip(alpha, EPS, 1.0 - EPS)
    ub = jnp.maximum(ub, ua + EPS)
    return (mu, sigma, fm, ua, ub, alpha, quart)


if __name__ == "__main__":
    B, in_features = 16, 32
    key = jax.random.PRNGKey(0)
    kx, kp = jax.random.split(key)
    x = jax.random.normal(kx, (B, in_features), jnp.float32)
    params = init_params(kp, in_features)

    outs = jax.block_until_ready(mixture_model_heads(x, params))

    # Tight check against a reference that mirrors the kernel's bf16 MXU inputs.
    refs_mirror = reference(x, params, matmul_dtype=jnp.bfloat16)
    for o, r in zip(outs, refs_mirror):
        np.testing.assert_allclose(np.asarray(o), np.asarray(r), rtol=2e-3, atol=2e-5)

    # Sanity check against the full-f32 PyTorch semantics (bf16 MXU tolerance).
    refs_f32 = reference(x, params)
    for o, r in zip(outs, refs_f32):
        np.testing.assert_allclose(np.asarray(o), np.asarray(r), rtol=5e-2, atol=5e-2)

    print("KERNEL_OK")
</pallas_src>

<mosaic_0001>
module attributes {stable_mosaic.version = 11 : i64} {
  func.func @_heads_kernel(%arg0: i32, %arg1: memref<8x32xbf16, #tpu.memory_space<vmem>>, %arg2: memref<32x128xbf16, #tpu.memory_space<vmem>>, %arg3: memref<1x128xf32, #tpu.memory_space<vmem>>, %arg4: memref<32x128xbf16, #tpu.memory_space<vmem>>, %arg5: memref<128x128xbf16, #tpu.memory_space<vmem>>, %arg6: memref<1x128xf32, #tpu.memory_space<vmem>>, %arg7: memref<8x128xf32, #tpu.memory_space<vmem>>) attributes {dimension_semantics = [#tpu.dimension_semantics<parallel>], iteration_bounds = array<i64: 2>, scalar_prefetch = 0 : i64, scratch_operands = 0 : i64, tpu.core_type = #tpu.core_type<tc>, window_params = [{transform_indices = @transform_0, window_bounds = array<i64: 8, 32>}, {pipeline_mode = #tpu.pipeline_mode<synchronous>, transform_indices = @transform_1, window_bounds = array<i64: 32, 128>}, {pipeline_mode = #tpu.pipeline_mode<synchronous>, transform_indices = @transform_2, window_bounds = array<i64: 1, 128>}, {pipeline_mode = #tpu.pipeline_mode<synchronous>, transform_indices = @transform_3, window_bounds = array<i64: 32, 128>}, {pipeline_mode = #tpu.pipeline_mode<synchronous>, transform_indices = @transform_4, window_bounds = array<i64: 128, 128>}, {pipeline_mode = #tpu.pipeline_mode<synchronous>, transform_indices = @transform_5, window_bounds = array<i64: 1, 128>}, {transform_indices = @transform_6, window_bounds = array<i64: 8, 128>}]} {
    %c0 = arith.constant 0 : index
    %c0_0 = arith.constant 0 : index
    %0 = vector.load %arg1[%c0, %c0_0] : memref<8x32xbf16, #tpu.memory_space<vmem>>, vector<8x32xbf16>
    %c0_1 = arith.constant 0 : index
    %c0_2 = arith.constant 0 : index
    %1 = vector.load %arg2[%c0_1, %c0_2] : memref<32x128xbf16, #tpu.memory_space<vmem>>, vector<32x128xbf16>
    %cst = arith.constant dense<0.000000e+00> : vector<8x128xf32>
    %2 = tpu.matmul %0, %1, %cst {dimension_numbers = #tpu.dot_dimension_numbers<[1], [0], [0], [1], [0, 0, 1, 1], [], []>} : vector<8x32xbf16>, vector<32x128xbf16>, vector<8x128xf32> -> vector<8x128xf32>
    %c0_3 = arith.constant 0 : index
    %c0_4 = arith.constant 0 : index
    %3 = vector.load %arg3[%c0_3, %c0_4] : memref<1x128xf32, #tpu.memory_space<vmem>>, vector<1x128xf32>
    %4 = vector.broadcast %3 : vector<1x128xf32> to vector<8x128xf32>
    %5 = arith.addf %2, %4 : vector<8x128xf32>
    %6 = arith.negf %5 : vector<8x128xf32>
    %7 = math.exp %6 : vector<8x128xf32>
    %cst_5 = arith.constant 1.000000e+00 : f32
    %8 = vector.broadcast %cst_5 : f32 to vector<8x128xf32>
    %9 = arith.addf %8, %7 : vector<8x128xf32>
    %10 = arith.divf %8, %9 : vector<8x128xf32>
    %c0_6 = arith.constant 0 : index
    %c0_7 = arith.constant 0 : index
    %11 = vector.load %arg4[%c0_6, %c0_7] : memref<32x128xbf16, #tpu.memory_space<vmem>>, vector<32x128xbf16>
    %cst_8 = arith.constant dense<0.000000e+00> : vector<8x128xf32>
    %12 = tpu.matmul %0, %11, %cst_8 {dimension_numbers = #tpu.dot_dimension_numbers<[1], [0], [0], [1], [0, 0, 1, 1], [], []>} : vector<8x32xbf16>, vector<32x128xbf16>, vector<8x128xf32> -> vector<8x128xf32>
    %13 = arith.truncf %10 : vector<8x128xf32> to vector<8x128xbf16>
    %c0_9 = arith.constant 0 : index
    %c0_10 = arith.constant 0 : index
    %14 = vector.load %arg5[%c0_9, %c0_10] : memref<128x128xbf16, #tpu.memory_space<vmem>>, vector<128x128xbf16>
    %cst_11 = arith.constant dense<0.000000e+00> : vector<8x128xf32>
    %15 = tpu.matmul %13, %14, %cst_11 {dimension_numbers = #tpu.dot_dimension_numbers<[1], [0], [0], [1], [0, 0, 1, 1], [], []>} : vector<8x128xbf16>, vector<128x128xbf16>, vector<8x128xf32> -> vector<8x128xf32>
    %16 = arith.addf %12, %15 : vector<8x128xf32>
    %c0_12 = arith.constant 0 : index
    %c0_13 = arith.constant 0 : index
    %17 = vector.load %arg6[%c0_12, %c0_13] : memref<1x128xf32, #tpu.memory_space<vmem>>, vector<1x128xf32>
    %18 = vector.broadcast %17 : vector<1x128xf32> to vector<8x128xf32>
    %19 = arith.addf %16, %18 : vector<8x128xf32>
    %20 = tpu.iota {dimensions = array<i32: 1>} : vector<8x128xi32>
    %21 = arith.negf %19 : vector<8x128xf32>
    %22 = math.exp %21 : vector<8x128xf32>
    %cst_14 = arith.constant 1.000000e+00 : f32
    %23 = vector.broadcast %cst_14 : f32 to vector<8x128xf32>
    %24 = arith.addf %23, %22 : vector<8x128xf32>
    %25 = arith.divf %23, %24 : vector<8x128xf32>
    %cst_15 = arith.constant 0.000000e+00 : f32
    %26 = vector.broadcast %cst_15 : f32 to vector<8x128xf32>
    %27 = arith.maximumf %19, %26 : vector<8x128xf32>
    %28 = vector.broadcast %cst_15 : f32 to vector<8x128xf32>
    %29 = arith.subf %19, %28 : vector<8x128xf32>
    %30 = arith.cmpf one, %29, %29 : vector<8x128xf32>
    %31 = vector.broadcast %cst_15 : f32 to vector<8x128xf32>
    %32 = arith.addf %19, %31 : vector<8x128xf32>
    %33 = math.absf %29 : vector<8x128xf32>
    %cst_16 = arith.constant 0.000000e+00 : f32
    %34 = vector.broadcast %cst_16 : f32 to vector<8x128xf32>
    %35 = arith.subf %34, %33 : vector<8x128xf32>
    %36 = math.exp %35 : vector<8x128xf32>
    %37 = math.log1p %36 : vector<8x128xf32>
    %38 = arith.addf %27, %37 : vector<8x128xf32>
    %39 = arith.select %30, %32, %38 : vector<8x128xi1>, vector<8x128xf32>
    %cst_17 = arith.constant 9.99999997E-7 : f32
    %40 = vector.broadcast %cst_17 : f32 to vector<8x128xf32>
    %41 = arith.maximumf %39, %40 : vector<8x128xf32>
    %c8_i32 = arith.constant 8 : i32
    %42 = vector.broadcast %c8_i32 : i32 to vector<8x128xi32>
    %43 = arith.cmpi sge, %20, %42 : vector<8x128xi32>
    %c12_i32 = arith.constant 12 : i32
    %44 = vector.broadcast %c12_i32 : i32 to vector<8x128xi32>
    %45 = arith.cmpi slt, %20, %44 : vector<8x128xi32>
    %46 = arith.andi %43, %45 : vector<8x128xi1>
    %47 = arith.select %46, %41, %25 : vector<8x128xi1>, vector<8x128xf32>
    %c20_i32 = arith.constant 20 : i32
    %48 = vector.broadcast %c20_i32 : i32 to vector<8x128xi32>
    %49 = arith.cmpi sge, %20, %48 : vector<8x128xi32>
    %c24_i32 = arith.constant 24 : i32
    %50 = vector.broadcast %c24_i32 : i32 to vector<8x128xi32>
    %51 = arith.cmpi slt, %20, %50 : vector<8x128xi32>
    %52 = arith.andi %49, %51 : vector<8x128xi1>
    %cst_18 = arith.constant 9.99999997E-7 : f32
    %cst_19 = arith.constant 0.999998986 : f32
    %53 = vector.broadcast %cst_18 : f32 to vector<8x128xf32>
    %54 = arith.maximumf %53, %47 : vector<8x128xf32>
    %55 = vector.broadcast %cst_19 : f32 to vector<8x128xf32>
    %56 = arith.minimumf %55, %54 : vector<8x128xf32>
    %57 = arith.select %52, %56, %47 : vector<8x128xi1>, vector<8x128xf32>
    %c4_i32 = arith.constant 4 : i32
    %58 = tpu.dynamic_rotate %57 by %c4_i32 dim 1 : vector<8x128xf32>, i32 -> vector<8x128xf32>
    %c16_i32 = arith.constant 16 : i32
    %59 = vector.broadcast %c16_i32 : i32 to vector<8x128xi32>
    %60 = arith.cmpi sge, %20, %59 : vector<8x128xi32>
    %c20_i32_20 = arith.constant 20 : i32
    %61 = vector.broadcast %c20_i32_20 : i32 to vector<8x128xi32>
    %62 = arith.cmpi slt, %20, %61 : vector<8x128xi32>
    %63 = arith.andi %60, %62 : vector<8x128xi1>
    %cst_21 = arith.constant 9.99999997E-7 : f32
    %64 = vector.broadcast %cst_21 : f32 to vector<8x128xf32>
    %65 = arith.addf %58, %64 : vector<8x128xf32>
    %66 = arith.maximumf %57, %65 : vector<8x128xf32>
    %67 = arith.select %63, %66, %57 : vector<8x128xi1>, vector<8x128xf32>
    %c4_i32_22 = arith.constant 4 : i32
    %68 = vector.broadcast %c4_i32_22 : i32 to vector<8x128xi32>
    %69 = arith.cmpi slt, %20, %68 : vector<8x128xi32>
    %70 = arith.select %69, %10, %67 : vector<8x128xi1>, vector<8x128xf32>
    %c0_23 = arith.constant 0 : index
    %c0_24 = arith.constant 0 : index
    %71 = vector.load %arg7[%c0_23, %c0_24] : memref<8x128xf32, #tpu.memory_space<vmem>>, vector<8x128xf32>
    tpu.vector_store %arg7[%c0_23, %c0_24], %70 {strides = array<i32>} : memref<8x128xf32, #tpu.memory_space<vmem>>, vector<8x128xf32>,
    return
  }
  func.func @transform_0(%arg0: i32) -> (i32, i32) {
    %c0_i32 = arith.constant 0 : i32
    %c0_i32_0 = arith.constant 0 : i32
    return %arg0, %c0_i32 : i32, i32
  }
  func.func @transform_1(%arg0: i32) -> (i32, i32) {
    %c0_i32 = arith.constant 0 : i32
    %c0_i32_0 = arith.constant 0 : i32
    %c0_i32_1 = arith.constant 0 : i32
    return %c0_i32, %c0_i32_0 : i32, i32
  }
  func.func @transform_2(%arg0: i32) -> (i32, i32) {
    %c0_i32 = arith.constant 0 : i32
    %c0_i32_0 = arith.constant 0 : i32
    %c0_i32_1 = arith.constant 0 : i32
    return %c0_i32, %c0_i32_0 : i32, i32
  }
  func.func @transform_3(%arg0: i32) -> (i32, i32) {
    %c0_i32 = arith.constant 0 : i32
    %c0_i32_0 = arith.constant 0 : i32
    %c0_i32_1 = arith.constant 0 : i32
    return %c0_i32, %c0_i32_0 : i32, i32
  }
  func.func @transform_4(%arg0: i32) -> (i32, i32) {
    %c0_i32 = arith.constant 0 : i32
    %c0_i32_0 = arith.constant 0 : i32
    %c0_i32_1 = arith.constant 0 : i32
    return %c0_i32, %c0_i32_0 : i32, i32
  }
  func.func @transform_5(%arg0: i32) -> (i32, i32) {
    %c0_i32 = arith.constant 0 : i32
    %c0_i32_0 = arith.constant 0 : i32
    %c0_i32_1 = arith.constant 0 : i32
    return %c0_i32, %c0_i32_0 : i32, i32
  }
  func.func @transform_6(%arg0: i32) -> (i32, i32) {
    %c0_i32 = arith.constant 0 : i32
    %c0_i32_0 = arith.constant 0 : i32
    return %arg0, %c0_i32 : i32, i32
  }
}

</mosaic_0001>

<bundles_post_ra>
// kernel: tpu_custom_call.1
= control target key start
LH: loop header
LB: loop body
LE: loop exit
PB: predicated region body
PF: predicated region fallthrough
CT: control target
= control target key end

     0   :  { %11 = vsyncpa [#allocation3], 0  ;;  %s1249_s0 = inlined_call_operand.hbm [shape: bf16[16,32], index: 0, kind: input, shape index: {}]   ;;  %s1250_s1 = inlined_call_operand.hbm [shape: bf16[32,128], index: 1, kind: input, shape index: {}]   ;;  %s1251_s2 = inlined_call_operand.vmem [shape: f32[1,128], index: 2, kind: input, shape index: {}]   ;;  %s1252_s3 = inlined_call_operand.hbm [shape: bf16[32,128], index: 3, kind: input, shape index: {}]   ;;  %s1253_s4 = inlined_call_operand.hbm [shape: bf16[128,128], index: 4, kind: input, shape index: {}]   ;;  %s1254_s5 = inlined_call_operand.vmem [shape: f32[1,128], index: 5, kind: input, shape index: {}]   ;;  %s1255_s6 = inlined_call_operand.hbm [shape: f32[16,128], index: 6, kind: output, shape index: {}]  }
   0x1   :  { %13 = vsyncpa [#allocation3 + $0x1], 0 }
   0x2   :  { %14 = vsyncpa [#allocation6], 0 }
   0x3   :  { %15 = vsyncpa [#allocation9], 0 }
   0x4   :  { %16 = vsyncpa [#allocation4], 0 }
   0x5   :  { %18 = vsyncpa [#allocation4 + $0x1], 0  ;;  %s1078_s21 = smov 0   ;;  %s1080_s22 = smov 0  }
   0x6   :  { %s1082_s23 = smov 0   ;;  %s1084_s24 = smov 0  }
   0x7 LB: > { %s197_s27 = sshll.u32 %s1250_s1, 4  ;;  %s1102_s28 = sadd.s32 4294967295, %s1035_s24   ;;  %s1035_s24 = sphi %s1084_s24, %s1266_s24   ;;  %s1031_s23 = sphi %s1082_s23, %s1265_s23   ;;  %s1027_s22 = sphi %s1080_s22, %s1264_s22   ;;  %s1023_s21 = sphi %s1078_s21, %s1263_s21   ;;  %s198_s27 = int_to_ptr.hbm [resolvable:$true] %s197_s27 }
   0x8   : > { %p666_p0 = scmp.ge.s32.totalorder %s1035_s24, 1  ;;  %p45_p1 = scmp.eq.s32.totalorder %s1102_s28, 0 }
   0x9   : > { %p186_p2 = scmp.lt.s32.totalorder %s1035_s24, 3  ;;  %s1037_s30 = smov [#allocation5]  }
   0xa   : > { %s199_s7 = sshll.u32 %s1037_s30, 4  ;;  %s214_s10 = sshll.u32 %s1252_s3, 4  ;;  %s200_s7 = int_to_ptr.vmem [resolvable:$true] %s199_s7  ;;  %s215_s10 = int_to_ptr.hbm [resolvable:$true] %s214_s10 }
   0xb   : > { %p1107_p3 = pnand %p666_p0, %p186_p2  ;;  %s228_s14 = sshll.u32 %s1253_s4, 4  ;;  %s229_s14 = int_to_ptr.hbm [resolvable:$true] %s228_s14 }
   0xc   : > { %s1038_s15 = smov [#allocation7]   ;;  %s1039_s17 = smov 64  }
   0xd   : > { %p763_p4 = pneg %p1107_p3  ;;  %s216_s16 = sshll.u32 %s1038_s15, 4  ;;  %s217_s16 = int_to_ptr.vmem [resolvable:$true] %s216_s16 }
   0xe   : > { %s1040_s18 = smov 4   ;;  %s1041_s19 = smov [#allocation8]  }
   0xf   : > { %p1119_p6 = pnand %p763_p4, %p45_p1  ;;  %s230_s20 = sshll.u32 %s1041_s19, 4  ;;  %s231_s20 = int_to_ptr.vmem [resolvable:$true] %s230_s20 }
  0x10   : > { %s665_s25 = sadd.s32 4294967294, %s1035_s24   ;;  %s1134_s26 = sadd.s32 1, %s1035_s24  }
  0x11   : > { %766 = dma.hbm_to_vmem [thread:$0]  (!%p1119_p6), %s198_s27, 256, %s200_s7, [#allocation6], %s1039_s17, %s1039_s17, %s1040_s18  }
  0x12   : > { %769 = dma.hbm_to_vmem [thread:$0]  (!%p1119_p6), %s215_s10, 256, %s217_s16, [#allocation6], %s1039_s17, %s1039_s17, %s1040_s18  }
  0x13   : > { %772 = dma.hbm_to_vmem [thread:$0]  (!%p1119_p6), %s229_s14, 1024, %s231_s20, [#allocation9], %s1039_s17, %s1039_s17, %s1040_s18  }
  0x14   : > { %s31_s30 = sadd.s32 1, %s1031_s23  ;;  %s28_s27 = ssub.s32 %s1035_s24, %s1134_s26 }
  0x15   : > { %p38_p7 = scmp.ne.s32.totalorder %s1031_s23, %s1027_s22  ;;  %p29_p8 = scmp.eq.s32.totalorder %s28_s27, 0 }
  0x16   : > { %p39_p9 = scmp.eq.s32.totalorder %s1035_s24, 0  ;;  %p44_p10 = scmp.ne.s32.totalorder %s1027_s22, %s1023_s21 }
  0x17   : > { %p173_p11 = scmp.eq.s32.totalorder %s1102_s28, 1  ;;  %p179_p0 = scmp.eq.s32.totalorder %s665_s25, 1 }
  0x18   : > { %s1146_s7 = scalar_select %p29_p8, %s1031_s23, %s31_s30  }
  0x19   : > { %p1150_p12 = por %p45_p1, %p44_p10  ;;  %p1154_p13 = por %p173_p11, %p38_p7 }
  0x1a   : > { %p40_p2 = por %p39_p9, %p38_p7  ;;  %s247_s10 = sand.u32 1, %s1031_s23  }
  0x1b   : > { %p1159_p4 = por %p179_p0, %p44_p10  ;;  %p784_p6 = scmp.lt.s32.totalorder %s1035_s24, 2 }
  0x1c   : > { %s671_s12 = sshll.u32 %s247_s10, 2  ;;  %s672_s13 = sshll.u32 %s1035_s24, 2 }
  0x1d   : > { %s255_s16 = scalar_lea.hbm %s1249_s0, %s672_s13  ;;  %s251_s18 = scalar_lea.vmem [#allocation2], %s671_s12 }
  0x1e   : > { %s257_s17 = sshll.u32 %s255_s16, 4  ;;  %s259_s19 = sshll.u32 %s251_s18, 4  ;;  %s258_s17 = int_to_ptr.hbm [resolvable:$true] %s257_s17  ;;  %s260_s19 = int_to_ptr.vmem [resolvable:$true] %s259_s19 }
  0x1f   : > { %p1168_p8 = pnand %p784_p6, %p40_p2  ;;  %s248_s25 = scalar_lea.sflag [#allocation3], %s247_s10 }
  0x20   : > { %s931_s30 = sshra.s32 %s258_s17, 4  ;;  %s938_s12 = scalar_lea.hbm %s1249_s0, 8  ;;  %s932_s30 = int_to_ptr.hbm [resolvable:$true] %s931_s30 }
  0x21   : > { %s933_s27 = scalar_lea.hbm %s932_s30, 4  ;;  %p935_p9 = pneg %p1168_p8 }
  0x22   : > { %p934_p7 = scmp.ne.s32.totalorder %s932_s30, %s933_s27  ;;  %p939_p0 = scmp.lt.s32.totalorder %s932_s30, %s1249_s0 }
  0x23   : > { %p940_p2 = scmp.lt.s32.totalorder %s938_s12, %s933_s27 }
  0x24   : > { %p936_p10 = pnand %p935_p9, %p934_p7 }
  0x25   : > { %p941_p6 = por %p940_p2, %p939_p0 }
  0x26   : > { %p937_p11 = pneg %p936_p10 }
  0x28   : > { %p942_p5 = pnand %p941_p6, %p937_p11 }
  0x2a   : > { %945 = shalt.err (!%p942_p5)
}
  0x2b   : > { %776 = dma.hbm_to_vmem [thread:$0]  (!%p1168_p8), %s258_s17, 64, %s260_s19, %s248_s25  }
  0x2c   : > { %268 = sbr.rel (%p1107_p3) target bundleno = 510 (0x1fe), region = 44  ;;  %s1185_s10 = sand.u32 (!%p1107_p3), 1, %s1027_s22  }
  0x2d   : > { %s674_s18 = sshll.u32 (!%p1107_p3), %s1185_s10, 2  ;;  %s271_s13 = scalar_lea.sflag (!%p1107_p3), [#allocation3], %s1185_s10 }
  0x2e   : > { %s274_s14 = scalar_lea.vmem (!%p1107_p3), [#allocation2], %s674_s18 }
  0x31   : > { %1006 = dma.done.wait (%p1150_p12), %s271_s13, 64  }
  0x32   : > { %1008 = vsyncadd (%p1150_p12), %s271_s13, 4294967232 }
  0x33   : > { %1010 = dma.done.wait (%p45_p1), [#allocation6], 512  }
  0x34   : > { %1012 = vsyncadd (%p45_p1), [#allocation6], 4294966784 }
  0x35   : > { %1014 = dma.done.wait (%p45_p1), [#allocation9], 1024  }
  0x36   : > { %1016 = vsyncadd (%p45_p1), [#allocation9], 4294966272  ;;  %v736_v0 = vld [vmem:[#allocation5 + $0x8] sm:$0xff]  ;;  %v735_v1 = vld [vmem:[#allocation5] sm:$0xff]  ;;  %vm341_vm0 = vcmask 261120   ;;  %v489_v45 = vlaneseq  ;;  %s1042_s20 = smov 4  }
  0x37   : > { %351 = vmatpush.bf16.msra.mxu0 %v736_v0  ;;  %v320_v2 = vld [vmem:[%s274_s14] sm:$0xf]  ;;  %v745_v4 = vld [vmem:[#allocation8 + $0x30] sm:$0xff]  ;;  %v744_v5 = vld [vmem:[#allocation8 + $0x28] sm:$0xff]  ;;  %s678_s25 = sshll.u32 %s1185_s10, 3  ;;  %s732_s30 = sshll.u32 %s1102_s28, 3 }
  0x38   : > { %v746_v3 = vld [vmem:[#allocation8 + $0x38] sm:$0xff]  ;;  %v743_v7 = vld [vmem:[#allocation8 + $0x20] sm:$0xff]  ;;  %v737_v8 = vld [vmem:[#allocation7] sm:$0xff]  ;;  %v490_v49 = vand.u32 127, %v489_v45  ;;  %s561_s15 = scalar_lea.hbm %s1255_s6, %s732_s30  ;;  %s318_s16 = scalar_lea.vmem [#allocation10], %s678_s25 }
  0x39   : > { %446 = vmatpush.bf16.msra.mxu1 %v746_v3  ;;  %v738_v6 = vld [vmem:[#allocation7 + $0x8] sm:$0xff]  ;;  %v741_v10 = vld [vmem:[#allocation8 + $0x10] sm:$0xff]  ;;  %v740_v11 = vld [vmem:[#allocation8 + $0x8] sm:$0xff]  ;;  %s563_s18 = sshll.u32 %s318_s16, 4  ;;  %s565_s13 = sshll.u32 %s561_s15, 4  ;;  %s564_s18 = int_to_ptr.vmem [resolvable:$true] %s563_s18  ;;  %s566_s13 = int_to_ptr.hbm [resolvable:$true] %s565_s13 }
  0x3a   : > { %477 = vmatpush.bf16.msra.mxu2 %v738_v6  ;;  %v742_v9 = vld [vmem:[#allocation8 + $0x18] sm:$0xff]  ;;  %v739_v12 = vld [vmem:[#allocation8] sm:$0xff]  ;;  %vm529_vm5 = vcmp.ge.s32.totalorder %v490_v49, 8  ;;  %vm530_vm8 = vcmp.lt.s32.totalorder %v490_v49, 12  ;;  %vm533_vm14 = vcmp.ge.s32.totalorder %v490_v49, 20  ;;  %vm534_vm15 = vcmp.lt.s32.totalorder %v490_v49, 24 }
  0x3b   : > { %352 = vmatpush.bf16.msra.mxu0 %v735_v1  ;;  %v827_v13 = vld [vmem:[%s1251_s2] ss:$0 sm:$0xff]  ;;  %vm531_vm12 = vmand %vm529_vm5, %vm530_vm8  ;;  %s551_s28 = scalar_lea.sflag [#allocation4], %s1185_s10  ;;  %s975_s14 = sshra.s32 %s566_s13, 4  ;;  %s976_s14 = int_to_ptr.hbm [resolvable:$true] %s975_s14 }
  0x3c   : > { %v828_v33 = vld [vmem:[%s1254_s5] ss:$0 sm:$0xff]  ;;  %s977_s29 = scalar_lea.hbm %s976_s14, 8  ;;  %s981_s19 = scalar_lea.hbm %s1255_s6, 16 }
  0x3d   : > { %447 = vmatpush.bf16.msra.mxu1 %v745_v4  ;;  %p978_p1 = scmp.ne.s32.totalorder %s976_s14, %s977_s29  ;;  %p982_p12 = scmp.lt.s32.totalorder %s976_s14, %s1255_s6 }
  0x3e   : > { %687 = vmatmul.msk.bf16.vlgmr.msra.gmra.mxu0 %vm341_vm0, %v320_v2  ;;  %478 = vmatpush.bf16.msra.mxu2 %v737_v8  ;;  %p983_p8 = scmp.lt.s32.totalorder %s981_s19, %s977_s29 }
  0x3f   : > { %p979_p3 = pnand %p978_p1, %p1154_p13 }
  0x40   : > { %p984_p7 = por %p983_p8, %p982_p12 }
  0x41   : > { %448 = vmatpush.bf16.msra.mxu1 %v744_v5  ;;  %729 = vmatmul.msk.bf16.vlgmr.msra.gmra.mxu2 %vm341_vm0, %v320_v2  ;;  %vm535_vm0 = vmand %vm533_vm14, %vm534_vm15  ;;  %p980_p5 = pneg %p979_p3 }
  0x43   : > { %p985_p9 = pnand %p984_p7, %p980_p5 }
  0x45   : > { %449 = vmatpush.bf16.msra.mxu1 %v743_v7 }
  0x49   : > { %450 = vmatpush.bf16.msra.mxu1 %v742_v9 }
  0x4d   : > { %451 = vmatpush.bf16.msra.mxu1 %v741_v10 }
  0x51   : > { %452 = vmatpush.bf16.msra.mxu1 %v740_v11 }
  0x55   : > { %453 = vmatpush.bf16.msra.mxu1 %v739_v12 }
  0xbb   : > { %v354_v14 = vpop.f32.mrf.mxu0 }
  0xbc   : > { %v355_v15 = vadd.f32 %v827_v13, %v354_v14 }
  0xbe   : > { %v688_v16 = vmul.f32 -1.442695, %v355_v15 }
  0xc0   : > { %829 = vpow2.f32 %v688_v16 }
  0xc3   : > { %v356_v17 = vpop.f32.mrf.mxu0 }
  0xc4   : > { %v480_v31 = vpop.f32.mrf.mxu2 }
  0xc6   : > { %v830_v18 = vpop.eup %829 }
  0xc7   : > { %v361_v19 = vadd.f32 1.0, %v830_v18 }
  0xc9   : > { %831 = vrcp.f32 %v361_v19  ;;  %v373_v23 = vand.u32 2147483648, %v361_v19  ;;  %v371_v25 = vand.u32 2147483647, %v361_v19  ;;  %vm367_vm2 = vweird.f32 %v361_v19 }
  0xcb   : > { %v374_v27 = vor.u32 1.1754944e-38, %v373_v23  ;;  %vm372_vm4 = vcmp.eq.f32.partialorder %v371_v25, 8.507059e+37 }
  0xcc   : > { %v482_v32 = vpop.f32.mrf.mxu2 }
  0xcf   : > { %v832_v20 = vpop.eup %831 }
  0xd0   : > { %v363_v21 = vmul.f32 %v832_v20, %v361_v19  ;;  %vm368_vm1 = vweird.f32 %v832_v20 }
  0xd1   : > { %vm369_vm3 = vmor %vm367_vm2, %vm368_vm1  ;;  %vm541_vm1 = vcmp.ge.s32.totalorder %v490_v49, 16  ;;  %vm542_vm2 = vcmp.lt.s32.totalorder %v490_v49, 20 }
  0xd2   : > { %v364_v22 = vsub.f32 1.0, %v363_v21 }
  0xd4   : > { %v365_v24 = vmul.f32 %v832_v20, %v364_v22 }
  0xd6   : > { %v366_v26 = vadd.f32 %v832_v20, %v365_v24 }
  0xd8   : > { %v370_v28 = vsel %vm369_vm3, %v832_v20, %v366_v26  ;;  %vm543_vm3 = vmand %vm541_vm1, %vm542_vm2 }
  0xd9   : > { %v1206_v29 = vsel %vm372_vm4, %v374_v27, %v370_v28  ;;  %vm547_vm4 = vcmp.lt.s32.totalorder %v490_v49, 4 }
  0xda   : > { %v381_v30 = vpack.c.bf16 %v1206_v29, %v1206_v29 }
  0xdc   : > { %454 = vmatmul.bf16.vlgmr.msra.gmra.mxu1 %v381_v30 }
 0x159   : > { %v455_v34 = vpop.f32.mrf.mxu1 }
 0x15a   : > { %v481_v35 = vadd.f32 %v480_v31, %v455_v34 }
 0x15c   : > { %v488_v36 = vadd.f32 %v828_v33, %v481_v35 }
 0x15e   : > { %v730_v37 = vmul.f32 -1.442695, %v488_v36  ;;  %v513_v38 = vand.u32 2147483647, %v488_v36  ;;  %v510_v58 = vmax.f32 %v488_v36, 0.0  ;;  %vm511_vm11 = vcmp.ne.f32.partialorder %v488_v36, %v488_v36 }
 0x160   : > { %833 = vpow2.f32 %v730_v37  ;;  %v514_v39 = vsub.f32 0.0, %v513_v38 }
 0x161   : > { %v457_v40 = vpop.f32.mrf.mxu1 }
 0x162   : > { %v515_v41 = vmul.f32 1.442695, %v514_v39 }
 0x164   : > { %835 = vpow2.f32 %v515_v41 }
 0x166   : > { %v834_v42 = vpop.eup %833 }
 0x167   : > { %v494_v43 = vadd.f32 1.0, %v834_v42 }
 0x169   : > { %837 = vrcp.f32 %v494_v43  ;;  %v506_v59 = vand.u32 2147483648, %v494_v43  ;;  %vm500_vm9 = vweird.f32 %v494_v43  ;;  %v504_v61 = vand.u32 2147483647, %v494_v43 }
 0x16a   : > { %v836_v44 = vpop.eup %835 }
 0x16b   : > { %v517_v46 = vadd.f32 1.0, %v836_v44  ;;  %v520_v47 = vmul.f32 -0.5, %v836_v44  ;;  %v523_v52 = vand.u32 2147483647, %v836_v44  ;;  %v507_v1 = vor.u32 1.1754944e-38, %v506_v59 }
 0x16c   : > { %vm505_vm13 = vcmp.eq.f32.partialorder %v504_v61, 8.507059e+37 }
 0x16d   : > { %839 = vlog2.f32 %v517_v46  ;;  %v521_v51 = vadd.f32 1.0, %v520_v47  ;;  %vm524_vm7 = vcmp.lt.f32.partialorder %v523_v52, 0.0004427343 }
 0x16f   : > { %v838_v48 = vpop.eup %837  ;;  %v522_v57 = vmul.f32 %v836_v44, %v521_v51 }
 0x170   : > { %v496_v50 = vmul.f32 %v838_v48, %v494_v43  ;;  %vm501_vm6 = vweird.f32 %v838_v48 }
 0x171   : > { %vm502_vm10 = vmor %vm500_vm9, %vm501_vm6 }
 0x172   : > { %v497_v53 = vsub.f32 1.0, %v496_v50 }
 0x173   : > { %v840_v54 = vpop.eup %839 }
 0x174   : > { %v498_v55 = vmul.f32 %v838_v48, %v497_v53  ;;  %v519_v56 = vmul.f32 0.6931472, %v840_v54 }
 0x176   : > { %v499_v60 = vadd.f32 %v838_v48, %v498_v55  ;;  %v525_v62 = vsel %vm524_vm7, %v522_v57, %v519_v56 }
 0x177   : > { %v526_v63 = vadd.f32 %v525_v62, %v510_v58 }
 0x178   : > { %v503_v0 = vsel %vm502_vm10, %v838_v48, %v499_v60 }
 0x179   : > { %v527_v2 = vsel %vm511_vm11, %v488_v36, %v526_v63  ;;  %v508_v4 = vsel %vm505_vm13, %v507_v1, %v503_v0 }
 0x17a   : > { %v528_v3 = vmax.f32 %v527_v2, 1e-06 }
 0x17c   : > { %v532_v5 = vsel %vm531_vm12, %v528_v3, %v508_v4 }
 0x17d   : > { %v536_v6 = vmax.f32 %v532_v5, 1e-06 }
 0x17f   : > { %v537_v7 = vmin.f32 %v536_v6, 0.999999 }
 0x181   : > { %v538_v8 = vsel %vm535_vm0, %v537_v7, %v532_v5 }
 0x182   : > { %539 = vrot.lane.b32.xlu0 %v538_v8, %s1042_s20 }
 0x1f4   : > { %v540_v9 = vpop.permute.xlu0 %539 }
 0x1f5   : > { %v544_v10 = vadd.f32 1e-06, %v540_v9 }
 0x1f7   : > { %v545_v11 = vmax.f32 %v538_v8, %v544_v10 }
 0x1f9   : > { %v546_v12 = vsel %vm543_vm3, %v545_v11, %v538_v8 }
 0x1fa   : > { %v548_v13 = vsel %vm547_vm4, %v1206_v29, %v546_v12 }
 0x1fb   : > { %549 = vst [vmem:[%s318_s16] sm:$0xff] %v548_v13 }
 0x1fc   : > { %988 = shalt.err (!%p985_p9)
}
 0x1fd   : > { %761 = dma.vmem_to_hbm [thread:$0]  (%p1154_p13), %s564_s18, 128, %s566_s13, %s551_s28  }
 0x1fe PF: > { %s577_s10 = sand.u32 1, %s1023_s21   ;;  %p1262_p10 = scmp.ge.s32.totalorder %s1035_s24, 2 }
 0x1ff   : > { %s578_s30 = scalar_lea.sflag [#allocation4], %s577_s10 }
 0x200   : > { %p778_p11 = pnand %p1262_p10, %p1159_p4 }
 0x202   : > { %p779_p0 = pneg %p778_p11 }
 0x204   : > { %1018 = dma.done.wait (%p779_p0), %s578_s30, 128  }
 0x205   : > { %1020 = vsyncadd (%p779_p0), %s578_s30, 4294967168  ;;  %p21_p2 = scmp.ge.s32.totalorder %s1134_s26, 4   ;;  %s1263_s21 = smov %s1027_s22 }
 0x206   : > { %s1264_s22 = smov %s1031_s23  ;;  %s1265_s23 = smov %s1146_s7 }
 0x207   : > { %s1266_s24 = smov %s1134_s26  ;;  %23 = sbr.rel (!%p21_p2) target bundleno = 7 (0x7), region = 101 }
 0x20c   :  { %584 = vsyncpa [#allocation3], 1 }
 0x20d   :  { %586 = vsyncpa [#allocation3 + $0x1], 1 }
 0x20e   :  { %587 = vsyncpa [#allocation6], 1 }
 0x20f   :  { %588 = vsyncpa [#allocation9], 1 }
 0x210   :  { %589 = vsyncpa [#allocation4], 1 }
 0x211   :  { %591 = vsyncpa [#allocation4 + $0x1], 1 }

</bundles_post_ra>
